<compile_context>
chip_gen: v7x
topology: tpu7x:2x2x1
jax: 0.10.0
libtpu: 0.0.40
codegen_flags: <defaults>
</compile_context>

<pallas_src>
import math
import jax
import jax.numpy as jnp
from jax.experimental import pallas as pl
from jax.experimental.pallas import tpu as pltpu


def fourier_kernel(x_ref, wt_ref, o_ref):
    # x_ref:  (tm, K)   VMEM
    # wt_ref: (K,  N)   VMEM   (already multiplied by weight_scale on host)
    # o_ref:  (tm, 2N)  VMEM
    z = jnp.dot(x_ref[...], wt_ref[...], preferred_element_type=jnp.float32)
    # One full-width store of the whole tile (lane-dense when 2N % 128 == 0).
    o_ref[...] = jnp.concatenate([jnp.sin(z), jnp.cos(z)], axis=-1).astype(
        o_ref.dtype
    )


def _round_up(a, b):
    return ((a + b - 1) // b) * b


def fourier_layer(x, weight, weight_scale, *, tm=None):
    """x: (..., in_features); weight: (out_features, in_features)."""
    orig_shape = x.shape
    K = orig_shape[-1]
    N = weight.shape[0]

    x2d = x.reshape(-1, K)
    M = x2d.shape[0]
    dtype = x2d.dtype
    isz = jnp.dtype(dtype).itemsize

    # Sublane tile: 8 rows for 32-bit, 16 for 16-bit dtypes.
    sublane = 8 if isz >= 4 else 16

    if tm is None:
        # Large row tile, capped by a conservative VMEM budget (fits the
        # scoped defaults on v5e/v6e and leaves plenty of room on v7x).
        budget = 12 * 1024 * 1024
        per_row = 2 * (K + 2 * N) * isz          # double-buffered x + out rows
        fixed = 2 * K * N * isz                  # double-buffered weight
        tm = max(sublane, (budget - fixed) // max(per_row, 1))
        tm = min(tm, 1024)
    # Never tile larger than the (padded) problem, keep sublane alignment.
    tm = min(tm, _round_up(M, sublane))
    tm = max(sublane, (tm // sublane) * sublane)

    M_pad = _round_up(M, tm)
    if M_pad != M:
        x2d = jnp.pad(x2d, ((0, M_pad - M), (0, 0)))

    # Glue in plain JAX: scale + transpose the weight once (stays off the
    # in-kernel VPU path).
    w_t = (weight * weight_scale).T.astype(dtype)  # (K, N)

    grid = (M_pad // tm,)

    # Explicit VMEM budget: double-buffered input, weight and output tiles
    # (+ headroom), clamped to stay safe on v7x (64 MiB physical).
    vmem_bytes = 2 * (tm * K + K * N + tm * 2 * N) * isz
    vmem_limit = int(min(max(2 * vmem_bytes, 4 * 1024 * 1024),
                         48 * 1024 * 1024))

    cost = pl.CostEstimate(
        flops=2 * M_pad * N * K,
        transcendentals=2 * M_pad * N,
        bytes_accessed=isz * (M_pad * K + K * N + M_pad * 2 * N),
    )

    out = pl.pallas_call(
        fourier_kernel,
        out_shape=jax.ShapeDtypeStruct((M_pad, 2 * N), dtype),
        grid_spec=pltpu.PrefetchScalarGridSpec(
            num_scalar_prefetch=0,
            grid=grid,
            in_specs=[
                pl.BlockSpec((tm, K), lambda i: (i, 0)),
                pl.BlockSpec((K, N), lambda i: (0, 0)),
            ],
            out_specs=pl.BlockSpec((tm, 2 * N), lambda i: (i, 0)),
        ),
        compiler_params=pltpu.CompilerParams(
            dimension_semantics=("parallel",),
            vmem_limit_bytes=vmem_limit,
        ),
        cost_estimate=cost,
    )(x2d, w_t)

    if M_pad != M:
        out = out[:M]
    return out.reshape(*orig_shape[:-1], 2 * N)


def init_weight(key, out_features, in_features):
    # torch.nn.init.kaiming_uniform_(W, a=sqrt(5)) on an (out, in) matrix:
    # bound = sqrt(6 / ((1 + a^2) * fan_in)) = 1 / sqrt(fan_in)
    bound = 1.0 / math.sqrt(in_features)
    return jax.random.uniform(
        key, (out_features, in_features), jnp.float32, -bound, bound
    )


if __name__ == "__main__":
    key = jax.random.PRNGKey(0)
    kx, kw = jax.random.split(key)

    batch, seq = 2, 8
    in_features, out_features = 16, 64
    weight_scale = 30.0

    x = jax.random.normal(kx, (batch, seq, in_features), jnp.float32)
    weight = init_weight(kw, out_features, in_features)

    y = fourier_layer(x, weight, weight_scale)
    y = jax.block_until_ready(y)

    # Reference check in plain JAX (same semantics as the PyTorch forward).
    z_ref = x @ (weight * weight_scale).T
    y_ref = jnp.concatenate([jnp.sin(z_ref), jnp.cos(z_ref)], axis=-1)
    assert y.shape == (batch, seq, 2 * out_features)
    assert jnp.allclose(y, y_ref, atol=1e-5, rtol=1e-5)

    print("KERNEL_OK")
</pallas_src>

<mosaic_0001>
module attributes {stable_mosaic.version = 11 : i64} {
  func.func @fourier_kernel(%arg0: i32, %arg1: memref<16x16xf32, #tpu.memory_space<vmem>>, %arg2: memref<16x64xf32, #tpu.memory_space<vmem>>, %arg3: memref<16x128xf32, #tpu.memory_space<vmem>>) attributes {dimension_semantics = [#tpu.dimension_semantics<parallel>], iteration_bounds = array<i64: 1>, scalar_prefetch = 0 : i64, scratch_operands = 0 : i64, tpu.core_type = #tpu.core_type<tc>, window_params = [{transform_indices = @transform_0, window_bounds = array<i64: 16, 16>}, {pipeline_mode = #tpu.pipeline_mode<synchronous>, transform_indices = @transform_1, window_bounds = array<i64: 16, 64>}, {transform_indices = @transform_2, window_bounds = array<i64: 16, 128>}]} {
    %c0 = arith.constant 0 : index
    %c0_0 = arith.constant 0 : index
    %0 = vector.load %arg1[%c0, %c0_0] : memref<16x16xf32, #tpu.memory_space<vmem>>, vector<16x16xf32>
    %c0_1 = arith.constant 0 : index
    %c0_2 = arith.constant 0 : index
    %1 = vector.load %arg2[%c0_1, %c0_2] : memref<16x64xf32, #tpu.memory_space<vmem>>, vector<16x64xf32>
    %cst = arith.constant dense<0.000000e+00> : vector<16x64xf32>
    %2 = tpu.matmul %0, %1, %cst {dimension_numbers = #tpu.dot_dimension_numbers<[1], [0], [0], [1], [0, 0, 1, 1], [], []>} : vector<16x16xf32>, vector<16x64xf32>, vector<16x64xf32> -> vector<16x64xf32>
    %3 = math.sin %2 : vector<16x64xf32>
    %4 = math.cos %2 : vector<16x64xf32>
    %5 = tpu.concatenate %3, %4 in 1 : vector<16x64xf32>, vector<16x64xf32> -> vector<16x128xf32>
    %c0_3 = arith.constant 0 : index
    %c0_4 = arith.constant 0 : index
    %6 = vector.load %arg3[%c0_3, %c0_4] : memref<16x128xf32, #tpu.memory_space<vmem>>, vector<16x128xf32>
    tpu.vector_store %arg3[%c0_3, %c0_4], %5 {strides = array<i32>} : memref<16x128xf32, #tpu.memory_space<vmem>>, vector<16x128xf32>,
    return
  }
  func.func @transform_0(%arg0: i32) -> (i32, i32) {
    %c0_i32 = arith.constant 0 : i32
    %c0_i32_0 = arith.constant 0 : i32
    return %arg0, %c0_i32 : i32, i32
  }
  func.func @transform_1(%arg0: i32) -> (i32, i32) {
    %c0_i32 = arith.constant 0 : i32
    %c0_i32_0 = arith.constant 0 : i32
    %c0_i32_1 = arith.constant 0 : i32
    return %c0_i32, %c0_i32_0 : i32, i32
  }
  func.func @transform_2(%arg0: i32) -> (i32, i32) {
    %c0_i32 = arith.constant 0 : i32
    %c0_i32_0 = arith.constant 0 : i32
    return %arg0, %c0_i32 : i32, i32
  }
}

</mosaic_0001>

<bundles_post_ra>
// kernel: tpu_custom_call.1
= control target key start
LH: loop header
LB: loop body
LE: loop exit
PB: predicated region body
PF: predicated region fallthrough
CT: control target
= control target key end

     0   :  { %7 = vsyncpa [#allocation3], 0  ;;  %s843_s0 = inlined_call_operand.hbm [shape: f32[16,16], index: 0, kind: input, shape index: {}]   ;;  %s844_s1 = inlined_call_operand.hbm [shape: f32[16,64], index: 1, kind: input, shape index: {}]   ;;  %s845_s2 = inlined_call_operand.hbm [shape: f32[16,128], index: 2, kind: output, shape index: {}]  }
   0x1   :  { %8 = vsyncpa [#allocation6], 0 }
   0x2   :  { %9 = vsyncpa [#allocation4], 0  ;;  %s704_s9 = smov [#allocation2]   ;;  %s632_s13 = scalar_lea.hbm %s843_s0, 256 }
   0x3   :  { %s15_s10 = sshll.u32 %s704_s9, 4  ;;  %p633_p0 = scmp.ne.s32.totalorder %s843_s0, %s632_s13  ;;  %s16_s10 = int_to_ptr.vmem [resolvable:$true] %s15_s10 }
   0x4   :  { %p636_p1 = scmp.lt.u32.totalorder %s632_s13, %s843_s0 }
   0x6   :  { %p638_p2 = pnand %p636_p1, %p633_p0 }
   0x8   :  { %641 = shalt.err (!%p638_p2)
}
   0x9   :  { %s642_s18 = scalar_lea.vmem %s16_s10, 256  ;;  %p647_p4 = scmp.lt.s32.totalorder %s16_s10, %s16_s10 }
   0xa   :  { %p643_p3 = scmp.ne.s32.totalorder %s16_s10, %s642_s18  ;;  %p648_p5 = scmp.lt.s32.totalorder %s642_s18, %s642_s18 }
   0xc   :  { %p649_p6 = por %p648_p5, %p647_p4 }
   0xe   :  { %p650_p7 = pnand %p649_p6, %p643_p3 }
  0x10   :  { %653 = shalt.err (!%p650_p7)
}
  0x11   :  { %s705_s19 = smov 128   ;;  %s706_s20 = smov 8  }
  0x12   :  { %21 = dma.hbm_to_vmem [thread:$0]  %s843_s0, 256, %s16_s10, [#allocation3], %s705_s19, %s705_s19, %s706_s20  }
  0x13   :  { %s707_s23 = smov [#allocation5]   ;;  %s654_s27 = scalar_lea.hbm %s844_s1, 256 }
  0x14   :  { %s27_s24 = sshll.u32 %s707_s23, 4  ;;  %p655_p8 = scmp.ne.s32.totalorder %s844_s1, %s654_s27  ;;  %s28_s24 = int_to_ptr.vmem [resolvable:$true] %s27_s24 }
  0x15   :  { %p658_p9 = scmp.lt.u32.totalorder %s654_s27, %s844_s1 }
  0x17   :  { %p660_p10 = pnand %p658_p9, %p655_p8 }
  0x19   :  { %663 = shalt.err (!%p660_p10)
}
  0x1a   :  { %s664_s4 = scalar_lea.vmem %s28_s24, 256  ;;  %p669_p12 = scmp.lt.s32.totalorder %s28_s24, %s28_s24 }
  0x1b   :  { %p665_p11 = scmp.ne.s32.totalorder %s28_s24, %s664_s4  ;;  %p670_p13 = scmp.lt.s32.totalorder %s664_s4, %s664_s4 }
  0x1d   :  { %p671_p0 = por %p670_p13, %p669_p12 }
  0x1f   :  { %p672_p1 = pnand %p671_p0, %p665_p11 }
  0x21   :  { %675 = shalt.err (!%p672_p1)
}
  0x22   :  { %33 = dma.hbm_to_vmem [thread:$0]  %s844_s1, 256, %s28_s24, [#allocation6], %s705_s19, %s705_s19, %s706_s20  }
  0x23   :  { %698 = dma.done.wait [#allocation3], 256  }
  0x24   :  { %699 = vsyncadd [#allocation3], 4294967040 }
  0x25   :  { %700 = dma.done.wait [#allocation6], 256  }
  0x26   :  { %701 = vsyncadd [#allocation6], 4294967040  ;;  %vm44_vm0 = vcmask 130048   ;;  %v42_v0 = vld [vmem:[#allocation5] sm:$0xff]  ;;  %v43_v1 = vld [vmem:[#allocation5 + $0x8] sm:$0xff]  ;;  %s714_s1 = smov 64  }
  0x27   :  { %v40_v2 = vld [vmem:[#allocation2] sm:$0xff]  ;;  %v600_v3 = vpack.c.bf16 %v43_v1, %v42_v0  ;;  %v41_v4 = vld [vmem:[#allocation2 + $0x8] sm:$0xff]  ;;  %v708_v27 = vmov 683565275   ;;  %v709_v31 = vmov 2475754826  }
  0x28   :  { %597 = vmatprep.mubr.msk.f32.mxu0 %vm44_vm0, %v40_v2  ;;  %v710_v33 = vmov 2131351028   ;;  %v711_v35 = vmov 2102212464   ;;  %v712_v37 = vmov 920167782  }
  0x29   :  { %601 = vmatprep.subr.bf16.mxu0 %v600_v3  ;;  %v713_v44 = vmov 1326507024   ;;  %s715_s6 = smov [#allocation7]  }
  0x2a   :  { %603 = vmatpush3.bf16.msra.mxu0 %v600_v3  ;;  %s558_s7 = sshll.u32 %s715_s6, 4  ;;  %s559_s7 = int_to_ptr.vmem [resolvable:$true] %s558_s7 }
  0x2b   :  { %s676_s8 = scalar_lea.vmem %s559_s7, 256  ;;  %p681_p3 = scmp.lt.s32.totalorder %s559_s7, %s559_s7 }
  0x2c   :  { %p677_p2 = scmp.ne.s32.totalorder %s559_s7, %s676_s8  ;;  %p682_p4 = scmp.lt.s32.totalorder %s676_s8, %s676_s8 }
  0x2d   :  { %598 = vmatmul.mubr.msk.f32.vlgmr.msra.gmra.mrb[0].mxu0 %vm44_vm0, %v41_v4 }
  0x2e   :  { %p683_p5 = por %p682_p4, %p681_p3 }
  0x30   :  { %p684_p6 = pnand %p683_p5, %p677_p2 }
 0x100   :  { %v761_v5 = vpop.f32.mrb[0].mxu0 }
 0x101   :  { %v230_v6 = vand.u32 2147483647, %v761_v5  ;;  %v233_v7 = vand.u32 2139095040, %v761_v5  ;;  %v765_v8 = vpop.f32.mrb[1].mxu0  ;;  %vm232_vm15 = vcmp.lt.s32.totalorder %v761_v5, 0 }
 0x102   :  { %v129_v9 = vand.u32 2139095040, %v765_v8  ;;  %v126_v12 = vand.u32 2147483647, %v765_v8 }
 0x103   :  { %v234_v10 = vshrl.u32 %v233_v7, 23  ;;  %v237_v11 = vand.u32 8388607, %v230_v6  ;;  %vm231_vm0 = vcmp.le.f32.partialorder %v230_v6, 0.7853982 }
 0x104   :  { %v130_v13 = vshrl.u32 %v129_v9, 23  ;;  %v773_v18 = vand.u32 8388607, %v126_v12 }
 0x105   :  { %v577_v14 = vadd.s32 4294967169, %v234_v10  ;;  %v238_v17 = vor.u32 8388608, %v237_v11 }
 0x106   :  { %v573_v15 = vadd.s32 4294967169, %v130_v13  ;;  %v134_v25 = vor.u32 8388608, %v773_v18 }
 0x107   :  { %v240_v16 = vadd.s32 1, %v577_v14  ;;  %v775_v24 = vshll.u32 %v238_v17, 8 }
 0x108   :  { %v136_v19 = vadd.s32 1, %v573_v15 }
 0x109   :  { %vm241_vm1 = vcmp.gt.s32.totalorder %v240_v16, 0 }
 0x10a   :  { %v242_v20 = vsel %vm241_vm1, %v240_v16, 0  ;;  %vm137_vm2 = vcmp.gt.s32.totalorder %v136_v19, 0  ;;  %vm128_vm1 = vcmp.lt.s32.totalorder %v765_v8, 0 }
 0x10b   :  { %v243_v21 = vshrl.u32 %v242_v20, 5  ;;  %v244_v22 = vand.u32 31, %v242_v20  ;;  %v138_v23 = vsel %vm137_vm2, %v136_v19, 0  ;;  %v174_v19 = vshll.u32 %v134_v25, 8 }
 0x10c   :  { %v778_v29 = vshrl.u32 %v138_v23, 5  ;;  %v140_v30 = vand.u32 31, %v138_v23  ;;  %vm127_vm2 = vcmp.le.f32.partialorder %v126_v12, 0.7853982 }
 0x10d   :  { %v245_v26 = vsub.s32 32, %v244_v22  ;;  %v247_v28 = vshll.u32 %v708_v27, %v244_v22  ;;  %v250_v32 = vshll.u32 %v709_v31, %v244_v22  ;;  %v253_v34 = vshll.u32 %v710_v33, %v244_v22 }
 0x10e   :  { %v256_v36 = vshll.u32 %v711_v35, %v244_v22  ;;  %v259_v38 = vshll.u32 %v712_v37, %v244_v22  ;;  %vm262_vm3 = vcmp.lt.s32.totalorder %v243_v21, 1  ;;  %vm263_vm4 = vcmp.lt.s32.totalorder %v243_v21, 2 }
 0x10f   :  { %v248_v39 = vshrl.u32 %v709_v31, %v245_v26  ;;  %v251_v40 = vshrl.u32 %v710_v33, %v245_v26  ;;  %v254_v41 = vshrl.u32 %v711_v35, %v245_v26  ;;  %v246_v42 = vshrl.u32 %v708_v27, %v245_v26 }
 0x110   :  { %v257_v43 = vshrl.u32 %v712_v37, %v245_v26  ;;  %v260_v45 = vshrl.u32 %v713_v44, %v245_v26  ;;  %v141_v49 = vsub.s32 32, %v140_v30  ;;  %vm264_vm5 = vcmp.lt.s32.totalorder %v243_v21, 3 }
 0x111   :  { %v249_v46 = vor.u32 %v248_v39, %v247_v28  ;;  %v252_v47 = vor.u32 %v251_v40, %v250_v32  ;;  %v255_v48 = vor.u32 %v254_v41, %v253_v34  ;;  %vm265_vm6 = vcmp.lt.s32.totalorder %v243_v21, 4 }
 0x112   :  { %v258_v50 = vor.u32 %v257_v43, %v256_v36  ;;  %v261_v51 = vor.u32 %v260_v45, %v259_v38  ;;  %v143_v59 = vshll.u32 %v708_v27, %v140_v30  ;;  %v144_v62 = vshrl.u32 %v709_v31, %v141_v49 }
 0x113   :  { %v266_v52 = vsel %vm262_vm3, %v246_v42, %v249_v46  ;;  %v267_v53 = vsel %vm265_vm6, %v255_v48, 2102212464  ;;  %v270_v54 = vsel %vm262_vm3, %v249_v46, %v252_v47  ;;  %v274_v55 = vsel %vm262_vm3, %v252_v47, %v255_v48 }
 0x114   :  { %v268_v56 = vsel %vm264_vm5, %v252_v47, %v267_v53  ;;  %v271_v57 = vsel %vm265_vm6, %v258_v50, 920167782  ;;  %v275_v58 = vsel %vm265_vm6, %v261_v51, 1326507024  ;;  %v146_v63 = vshll.u32 %v709_v31, %v140_v30 }
 0x115   :  { %v272_v60 = vsel %vm264_vm5, %v255_v48, %v271_v57  ;;  %v276_v61 = vsel %vm264_vm5, %v258_v50, %v275_v58  ;;  %v269_v0 = vsel %vm263_vm4, %v266_v52, %v268_v56  ;;  %v147_v3 = vshrl.u32 %v710_v33, %v141_v49 }
 0x116   :  { %v273_v1 = vsel %vm263_vm4, %v270_v54, %v272_v60  ;;  %v277_v2 = vsel %vm263_vm4, %v274_v55, %v276_v61  ;;  %v145_v11 = vor.u32 %v144_v62, %v143_v59  ;;  %v149_v14 = vshll.u32 %v710_v33, %v140_v30 }
 0x117   :  { %v787_v4 = vmul.u32.u64.low %v775_v24, %v277_v2  ;;  %v788_v7 = vmul.u32.u64.high %v775_v24, %v277_v2, %v787_v4  ;;  %v791_v9 = vmul.u32.u64.low %v775_v24, %v273_v1  ;;  %v792_v10 = vmul.u32.u64.high %v775_v24, %v273_v1, %v791_v9 }
 0x118   :  { %v148_v13 = vor.u32 %v147_v3, %v146_v63  ;;  %v150_v15 = vshrl.u32 %v711_v35, %v141_v49  ;;  %v152_v16 = vshll.u32 %v711_v35, %v140_v30  ;;  %v153_v17 = vshrl.u32 %v712_v37, %v141_v49 }
 0x119   :  { %v156_v18 = vshrl.u32 %v713_v44, %v141_v49  ;;  %v285_v20 = vmul.u32 %v775_v24, %v269_v0  ;;  %v142_v21 = vshrl.u32 %v708_v27, %v141_v49  ;;  %v155_v23 = vshll.u32 %v712_v37, %v140_v30 }
 0x11a   :  { %v151_v22 = vor.u32 %v150_v15, %v149_v14  ;;  %vm287_vm7 = vc.u32 %v788_v7, %v791_v9  ;;  %v288_v26 = vadd.s32 1, %v792_v10  ;;  %v154_v28 = vor.u32 %v153_v17, %v152_v16 }
 0x11b   :  { %vm158_vm8 = vcmp.lt.s32.totalorder %v778_v29, 1  ;;  %v157_v31 = vor.u32 %v156_v18, %v155_v23  ;;  %vm160_vm9 = vcmp.lt.s32.totalorder %v778_v29, 3  ;;  %vm161_vm10 = vcmp.lt.s32.totalorder %v778_v29, 4 }
 0x11c   :  { %v166_v32 = vsel %vm158_vm8, %v145_v11, %v148_v13  ;;  %v289_v25 = vsel %vm287_vm7, %v288_v26, %v792_v10  ;;  %v163_v33 = vsel %vm161_vm10, %v151_v22, 2102212464  ;;  %v167_v24 = vsel %vm161_vm10, %v154_v28, 920167782 }
 0x11d   :  { %v170_v27 = vsel %vm158_vm8, %v148_v13, %v151_v22  ;;  %v290_v34 = vadd.s32 %v289_v25, %v285_v20  ;;  %vm159_vm11 = vcmp.lt.s32.totalorder %v778_v29, 2  ;;  %v168_v30 = vsel %vm160_vm9, %v151_v22, %v167_v24 }
 0x11e   :  { %v171_v35 = vsel %vm161_vm10, %v157_v31, 1326507024  ;;  %v162_v36 = vsel %vm158_vm8, %v142_v21, %v145_v11  ;;  %v164_v37 = vsel %vm160_vm9, %v148_v13, %v163_v33  ;;  %v169_v38 = vsel %vm159_vm11, %v166_v32, %v168_v30 }
 0x11f   :  { %v172_v39 = vsel %vm160_vm9, %v154_v28, %v171_v35  ;;  %v291_v40 = vadd.s32 536870912, %v290_v34  ;;  %v802_v42 = vmul.u32.u64.low %v174_v19, %v169_v38  ;;  %v803_v43 = vmul.u32.u64.high %v174_v19, %v169_v38, %v802_v42 }
 0x120   :  { %v173_v41 = vsel %vm159_vm11, %v170_v27, %v172_v39  ;;  %v165_v47 = vsel %vm159_vm11, %v162_v36, %v164_v37  ;;  %v286_v63 = vadd.s32 %v791_v9, %v788_v7  ;;  %vm322_vm6 = vweird.f32 %v761_v5 }
 0x121   :  { %v805_v44 = vmul.u32.u64.low %v174_v19, %v173_v41  ;;  %v806_v45 = vmul.u32.u64.high %v174_v19, %v173_v41, %v805_v44  ;;  %v292_v46 = vshrl.u32 %v291_v40, 30  ;;  %v184_v49 = vadd.s32 1, %v803_v43 }
 0x122   :  { %v181_v29 = vmul.u32 %v174_v19, %v165_v47 }
 0x123   :  { %v293_v48 = vshll.u32 %v292_v46, 30  ;;  %vm183_vm12 = vc.u32 %v806_v45, %v802_v42  ;;  %v182_v20 = vadd.s32 %v802_v42, %v806_v45  ;;  %v316_v9 = vsub.s32 4, %v292_v46 }
 0x124   :  { %v185_v51 = vsel %vm183_vm12, %v184_v49, %v803_v43 }
 0x125   :  { %v294_v50 = vsub.s32 %v290_v34, %v293_v48  ;;  %v186_v52 = vadd.s32 %v185_v51, %v181_v29  ;;  %v317_v24 = vsel %vm232_vm15, %v316_v9, %v292_v46 }
 0x126   :  { %v319_v36 = vsel %vm231_vm0, 0, %v317_v24 }
 0x127   :  { %v296_v53 = vsub.s32 0, %v294_v50  ;;  %v187_v54 = vadd.s32 536870912, %v186_v52  ;;  %v323_v39 = vadd.s32 3, %v319_v36 }
 0x129   :  { %v578_v55 = vmin.u32 %v296_v53, %v294_v50  ;;  %v188_v56 = vshrl.u32 %v187_v54, 30  ;;  %v324_v43 = vand.u32 3, %v323_v39  ;;  %v530_v53 = vand.u32 3, %v319_v36 }
 0x12b   :  { %v298_v57 = vclz %v578_v55  ;;  %v189_v58 = vshll.u32 %v188_v56, 30  ;;  %v212_v38 = vsub.s32 4, %v188_v56  ;;  %vm329_vm3 = vcmp.eq.s32.totalorder %v324_v43, 2 }
 0x12c   :  { %vm326_vm4 = vcmp.eq.s32.totalorder %v324_v43, 0  ;;  %vm325_vm5 = vcmp.lt.s32.totalorder %v324_v43, 2  ;;  %vm532_vm8 = vcmp.eq.s32.totalorder %v530_v53, 0  ;;  %vm535_vm9 = vcmp.eq.s32.totalorder %v530_v53, 2 }
 0x12d   :  { %v579_v59 = vadd.s32 4294967294, %v298_v57  ;;  %v190_v60 = vsub.s32 %v186_v52, %v189_v58  ;;  %v213_v41 = vsel %vm128_vm1, %v212_v38, %v188_v56 }
 0x12e   :  { %v215_v45 = vsel %vm127_vm2, 0, %v213_v41 }
 0x12f   :  { %vm580_vm13 = vcmp.lt.s32.totalorder %v579_v59, 0  ;;  %v192_v62 = vsub.s32 0, %v190_v60  ;;  %v219_v49 = vadd.s32 3, %v215_v45  ;;  %v427_v51 = vand.u32 3, %v215_v45 }
 0x130   :  { %v301_v61 = vsel %vm580_vm13, 0, %v579_v59 }
 0x131   :  { %v302_v0 = vsub.s32 32, %v301_v61  ;;  %v306_v1 = vsub.s32 4294967266, %v301_v61  ;;  %v574_v2 = vmin.u32 %v192_v62, %v190_v60  ;;  %v303_v3 = vshll.u32 %v294_v50, %v301_v61 }
 0x132   :  { %v220_v54 = vand.u32 3, %v219_v49  ;;  %vm428_vm7 = vcmp.lt.s32.totalorder %v427_v51, 2  ;;  %vm429_vm11 = vcmp.eq.s32.totalorder %v427_v51, 0  ;;  %vm432_vm12 = vcmp.eq.s32.totalorder %v427_v51, 2 }
 0x133   :  { %v304_v4 = vshrl.u32 %v286_v63, %v302_v0  ;;  %v307_v10 = vadd.s32 127, %v306_v1  ;;  %v194_v11 = vclz %v574_v2 }
 0x134   :  { %vm225_vm10 = vcmp.eq.s32.totalorder %v220_v54, 2  ;;  %vm221_vm13 = vcmp.lt.s32.totalorder %v220_v54, 2 }
 0x135   :  { %v305_v13 = vor.u32 %v304_v4, %v303_v3  ;;  %v308_v14 = vshll.u32 %v307_v10, 23  ;;  %v575_v15 = vadd.s32 4294967294, %v194_v11 }
 0x137   :  { %v309_v16 = vor.u32 4788187, %v308_v14  ;;  %vm576_vm14 = vcmp.lt.s32.totalorder %v575_v15, 0  ;;  %v312_v18 = vcvt.s32.f32 %v305_v13 }
 0x138   :  { %v197_v19 = vsel %vm576_vm14, 0, %v575_v15  ;;  %vm222_vm14 = vcmp.eq.s32.totalorder %v220_v54, 0 }
 0x139   :  { %v310_v17 = vand.u32 2147483647, %v309_v16  ;;  %v198_v21 = vsub.s32 32, %v197_v19  ;;  %v202_v22 = vsub.s32 4294967266, %v197_v19  ;;  %v199_v23 = vshll.u32 %v190_v60, %v197_v19 }
 0x13b   :  { %v313_v7 = vmul.f32 %v312_v18, %v310_v17  ;;  %v200_v26 = vshrl.u32 %v182_v20, %v198_v21  ;;  %v203_v28 = vadd.s32 127, %v202_v22 }
 0x13d   :  { %v314_v31 = vxor.u32 2147483648, %v313_v7  ;;  %v201_v32 = vor.u32 %v200_v26, %v199_v23  ;;  %v204_v25 = vshll.u32 %v203_v28, 23 }
 0x13f   :  { %v315_v33 = vsel %vm232_vm15, %v314_v31, %v313_v7  ;;  %v205_v34 = vor.u32 4788187, %v204_v25  ;;  %v208_v35 = vcvt.s32.f32 %v201_v32  ;;  %vm218_vm15 = vweird.f32 %v765_v8 }
 0x140   :  { %v318_v27 = vsel %vm231_vm0, %v761_v5, %v315_v33  ;;  %vm531_vm0 = vcmp.lt.s32.totalorder %v530_v53, 2 }
 0x141   :  { %624 = vcosq.f32 %v318_v27  ;;  %v206_v30 = vand.u32 2147483647, %v205_v34 }
 0x142   :  { %626 = vsinq.f32 %v318_v27 }
 0x143   :  { %v209_v37 = vmul.f32 %v208_v35, %v206_v30 }
 0x145   :  { %v210_v40 = vxor.u32 2147483648, %v209_v37 }
 0x147   :  { %v211_v6 = vsel %vm128_vm1, %v210_v40, %v209_v37  ;;  %vm548_vm1 = vcmask 523264  }
 0x148   :  { %v214_v42 = vsel %vm127_vm2, %v765_v8, %v211_v6 }
 0x149   :  { %628 = vcosq.f32 %v214_v42 }
 0x14a   :  { %630 = vsinq.f32 %v214_v42 }
 0x14b   :  { %v625_v44 = vpop.eup %624 }
 0x14c   :  { %v627_v46 = vpop.eup %626  ;;  %v330_v47 = vxor.u32 2147483648, %v625_v44 }
 0x14d   :  { %v327_v48 = vxor.u32 2147483648, %v627_v46 }
 0x14e   :  { %v331_v29 = vsel %vm329_vm3, %v330_v47, %v627_v46  ;;  %v537_v0 = vsel %vm535_vm9, %v330_v47, %v627_v46 }
 0x14f   :  { %v328_v50 = vsel %vm326_vm4, %v625_v44, %v327_v48  ;;  %v534_v63 = vsel %vm532_vm8, %v625_v44, %v327_v48 }
 0x150   :  { %v332_v12 = vsel %vm325_vm5, %v328_v50, %v331_v29  ;;  %v538_v10 = vsel %vm531_vm0, %v534_v63, %v537_v0 }
 0x151   :  { %v333_v52 = vsel %vm322_vm6, nan, %v332_v12  ;;  %v539_v11 = vsel %vm322_vm6, nan, %v538_v10 }
 0x153   :  { %v629_v55 = vpop.eup %628 }
 0x154   :  { %v631_v56 = vpop.eup %630  ;;  %v226_v57 = vxor.u32 2147483648, %v629_v55 }
 0x155   :  { %v223_v58 = vxor.u32 2147483648, %v631_v56 }
 0x156   :  { %v434_v59 = vsel %vm432_vm12, %v226_v57, %v631_v56  ;;  %v227_v60 = vsel %vm225_vm10, %v226_v57, %v631_v56 }
 0x157   :  { %v431_v61 = vsel %vm429_vm11, %v629_v55, %v223_v58  ;;  %v224_v62 = vsel %vm222_vm14, %v629_v55, %v223_v58 }
 0x158   :  { %v435_v1 = vsel %vm428_vm7, %v431_v61, %v434_v59  ;;  %v228_v2 = vsel %vm221_vm13, %v224_v62, %v227_v60 }
 0x159   :  { %v436_v3 = vsel %vm218_vm15, nan, %v435_v1  ;;  %v229_v4 = vsel %vm218_vm15, nan, %v228_v2 }
 0x15a   :  { %542 = vrot.lane.b32.xlu0 %v436_v3, %s714_s1 }
 0x15e   :  { %544 = vrot.lane.b32.xlu0 %v539_v11, %s714_s1 }
 0x1cc   :  { %v543_v13 = vpop.permute.xlu0 %542 }
 0x1cd   :  { %v549_v14 = vsel %vm548_vm1, %v229_v4, %v543_v13 }
 0x1ce   :  { %551 = vst [vmem:[#allocation7] sm:$0xff] %v549_v14 }
 0x1d0   :  { %v545_v8 = vpop.permute.xlu0 %544 }
 0x1d1   :  { %v550_v15 = vsel %vm548_vm1, %v333_v52, %v545_v8 }
 0x1d2   :  { %552 = vst [vmem:[#allocation7 + $0x8] sm:$0xff] %v550_v15 }
 0x1d3   :  { %687 = shalt.err (!%p684_p6)
}
 0x1d4   :  { %s688_s11 = scalar_lea.hbm %s845_s2, 256 }
 0x1d5   :  { %p689_p7 = scmp.ne.s32.totalorder %s845_s2, %s688_s11  ;;  %p692_p8 = scmp.lt.u32.totalorder %s688_s11, %s845_s2 }
 0x1d7   :  { %p694_p9 = pnand %p692_p8, %p689_p7 }
 0x1d9   :  { %697 = shalt.err (!%p694_p9)
}
 0x1da   :  { %564 = dma.vmem_to_hbm [thread:$0]  %s559_s7, 256, %s845_s2, [#allocation4], %s705_s19, %s705_s19, %s706_s20  }
 0x1db   :  { %702 = dma.done.wait [#allocation4], 256  }
 0x1dc   :  { %703 = vsyncadd [#allocation4], 4294967040 }
 0x1dd   :  { %568 = vsyncpa [#allocation3], 1 }
 0x1de   :  { %569 = vsyncpa [#allocation6], 1 }
 0x1df   :  { %570 = vsyncpa [#allocation4], 1 }

</bundles_post_ra>
